<compile_context>
chip_gen: v6e
topology: v6e:2x2x1
jax: 0.10.0
libtpu: 0.0.40
codegen_flags: <defaults>
</compile_context>

<pallas_src>
import functools
import math

import jax
import jax.numpy as jnp
from jax.experimental import pallas as pl
from jax.experimental.pallas import tpu as pltpu


def _attn_body(q_ref, k_ref, wq_ref, bq_ref, wk_ref, bk_ref, keep_ref, o_ref,
               *, d_k):
    # Per-head projections on the MXU (bf16 operands, f32 accumulate).
    q_h = (jnp.dot(q_ref[...], wq_ref[...], preferred_element_type=jnp.float32)
           + bq_ref[...])                                  # (S, dk_pad) f32
    k_h = (jnp.dot(k_ref[...], wk_ref[...], preferred_element_type=jnp.float32)
           + bk_ref[...])                                  # (S, dk_pad) f32

    # Scale Q (S*dk_pad multiplies -- cheaper than scaling the (S, S) scores).
    q_h = q_h * jnp.float32(1.0 / math.sqrt(d_k))

    # scores = Q_h @ K_h^T via last-dim contraction (no transpose materialized),
    # bf16 operands feeding the MXU, f32 accumulation.  Padded lanes are zero in
    # both operands so they contribute nothing.
    s = jax.lax.dot_general(
        q_h.astype(jnp.bfloat16), k_h.astype(jnp.bfloat16),
        dimension_numbers=(((1,), (1,)), ((), ())),
        preferred_element_type=jnp.float32)                # (S, S) f32

    if keep_ref is not None:
        keep = keep_ref[...].astype(jnp.float32)           # 1.0 = keep, 0.0 = masked
        # Exact masked_fill(-1e9):  kept -> s*1 + 0 ;  masked -> s*0 + (-1e9).
        s = s * keep + (keep - 1.0) * jnp.float32(1e9)

    # Numerically stable softmax over keys (exp -> EUP, reductions -> XLU).
    m = jnp.max(s, axis=-1, keepdims=True)
    p = jnp.exp(s - m)
    denom = jnp.sum(p, axis=-1, keepdims=True)
    o_ref[...] = (p * pl.reciprocal(denom, approx=True)).astype(o_ref.dtype)
    # TODO(synk): nn.Dropout(p=0.1) on the attention probabilities is stochastic;
    # it is the identity in eval mode and is intentionally not implemented here.


def _mha_kernel(q_ref, k_ref, wq_ref, bq_ref, wk_ref, bk_ref, o_ref, *, d_k):
    _attn_body(q_ref, k_ref, wq_ref, bq_ref, wk_ref, bk_ref, None, o_ref, d_k=d_k)


def _mha_kernel_masked(q_ref, k_ref, wq_ref, bq_ref, wk_ref, bk_ref, keep_ref,
                       o_ref, *, d_k):
    _attn_body(q_ref, k_ref, wq_ref, bq_ref, wk_ref, bk_ref, keep_ref, o_ref,
               d_k=d_k)


def multi_head_attention(query, key, wq, bq, wk, bk, *, h, mask=None,
                         out_dtype=None):
    """query/key: (B, S, D); wq/wk: (D, D) in nn.Linear (out, in) layout; bq/bk: (D,).

    mask (optional): (B, S, S), 0 = masked out.  Returns attention probabilities
    of shape (B, h, S, S) in `out_dtype` (default: query.dtype)."""
    B, S, D = query.shape
    assert D % h == 0
    d_k = D // h
    dk_pad = max(128, -(-d_k // 128) * 128)         # per-head lanes, 128-aligned
    out_dtype = query.dtype if out_dtype is None else out_dtype

    # ---- One-time wrapper-side layout plumbing (outside the grid loop) ----
    # Weights: (out,in) -> (in,out), split per head and zero-pad each head's
    # columns to dk_pad so every kernel slice is 128-lane aligned; cast to bf16.
    def _pad_w(w):
        wt = jnp.asarray(w, jnp.float32).T.reshape(D, h, d_k)
        wt = jnp.pad(wt, ((0, 0), (0, 0), (0, dk_pad - d_k)))
        return wt.reshape(D, h * dk_pad).astype(jnp.bfloat16)

    def _pad_b(b):
        bb = jnp.asarray(b, jnp.float32).reshape(h, d_k)
        bb = jnp.pad(bb, ((0, 0), (0, dk_pad - d_k)))
        return bb.reshape(1, h * dk_pad)            # f32: added post-accumulate

    wq_p, wk_p = _pad_w(wq), _pad_w(wk)
    bq_p, bk_p = _pad_b(bq), _pad_b(bk)
    q_b = query.astype(jnp.bfloat16)
    k_b = key.astype(jnp.bfloat16)

    in_specs = [
        # query / key: one batch per step, resident across the inner head axis.
        pl.BlockSpec((None, S, D), lambda b, hd: (b, 0, 0)),
        pl.BlockSpec((None, S, D), lambda b, hd: (b, 0, 0)),
        # per-head weight / bias tiles stream along the head axis.
        pl.BlockSpec((D, dk_pad), lambda b, hd: (0, hd)),
        pl.BlockSpec((1, dk_pad), lambda b, hd: (0, hd)),
        pl.BlockSpec((D, dk_pad), lambda b, hd: (0, hd)),
        pl.BlockSpec((1, dk_pad), lambda b, hd: (0, hd)),
    ]
    args = [q_b, k_b, wq_p, bq_p, wk_p, bk_p]
    mask_bytes = 0
    if mask is not None:
        keep = (jnp.asarray(mask) != 0).astype(jnp.bfloat16)   # 1 keep / 0 masked
        in_specs.append(pl.BlockSpec((None, S, S), lambda b, hd: (b, 0, 0)))
        args.append(keep)
        mask_bytes = keep.size * 2
        kernel = functools.partial(_mha_kernel_masked, d_k=d_k)
    else:
        kernel = functools.partial(_mha_kernel, d_k=d_k)

    cost = pl.CostEstimate(
        flops=B * h * (4 * S * D * dk_pad + 2 * S * S * dk_pad),
        transcendentals=B * h * S * S,
        bytes_accessed=int(
            (q_b.size + k_b.size) * 2                 # bf16 activations
            + (wq_p.size + wk_p.size) * 2             # bf16 weights
            + (bq_p.size + bk_p.size) * 4             # f32 biases
            + mask_bytes
            + B * h * S * S * jnp.dtype(out_dtype).itemsize),
    )

    return pl.pallas_call(
        kernel,
        out_shape=jax.ShapeDtypeStruct((B, h, S, S), out_dtype),
        grid_spec=pltpu.PrefetchScalarGridSpec(
            num_scalar_prefetch=0,
            grid=(B, h),
            in_specs=in_specs,
            out_specs=pl.BlockSpec((None, None, S, S),
                                   lambda b, hd: (b, hd, 0, 0)),
        ),
        compiler_params=pltpu.CompilerParams(
            # batch axis shards across TCs (v7x megacore); heads iterate inside.
            dimension_semantics=("parallel", "arbitrary"),
            # Headroom above the 16/32 MiB default scoped limit; still well below
            # v7x's 64 MiB physical VMEM per TensorCore.
            vmem_limit_bytes=48 * 1024 * 1024,
        ),
        cost_estimate=cost,
    )(*args)


def _reference(query, key, wq, bq, wk, bk, h, mask=None):
    B, S, D = query.shape
    d_k = D // h
    qp = query @ wq.T + bq
    kp = key @ wk.T + bk
    qh = qp.reshape(B, S, h, d_k).transpose(0, 2, 1, 3)
    kh = kp.reshape(B, S, h, d_k).transpose(0, 2, 1, 3)
    scores = jnp.einsum("bhqd,bhkd->bhqk", qh, kh) / math.sqrt(d_k)
    if mask is not None:
        scores = jnp.where(mask[:, None, :, :] == 0, -1e9, scores)
    return jax.nn.softmax(scores, axis=-1)


if __name__ == "__main__":
    rng = jax.random.PRNGKey(0)
    B, S, D, H = 2, 8, 32, 4      # batch, seq_len, d_model, num_heads (d_k = 8)

    k1, k2, k3, k4, k5, k6 = jax.random.split(rng, 6)
    query = jax.random.normal(k1, (B, S, D), dtype=jnp.float32)
    key_t = jax.random.normal(k2, (B, S, D), dtype=jnp.float32)
    wq = jax.random.normal(k3, (D, D), dtype=jnp.float32) * 0.02
    bq = jax.random.normal(k4, (D,), dtype=jnp.float32) * 0.02
    wk = jax.random.normal(k5, (D, D), dtype=jnp.float32) * 0.02
    bk = jax.random.normal(k6, (D,), dtype=jnp.float32) * 0.02
    # Deterministic causal-style mask (every query row keeps >= 1 key).
    mask = (jnp.arange(S)[:, None] >= jnp.arange(S)[None, :]).astype(jnp.int32)
    mask = jnp.broadcast_to(mask, (B, S, S))

    # bf16 operands (projections + scores) -> compare vs f32 reference at ~1e-2.
    TOL = dict(atol=1e-2, rtol=1e-2)

    # Unmasked path (mask=None is the PyTorch forward's default).
    attn = multi_head_attention(query, key_t, wq, bq, wk, bk, h=H)
    jax.block_until_ready(attn)
    ref = _reference(query, key_t, wq, bq, wk, bk, H)
    assert attn.shape == (B, H, S, S)
    assert jnp.allclose(attn, ref, **TOL), float(jnp.max(jnp.abs(attn - ref)))

    # Masked path.
    attn_m = multi_head_attention(query, key_t, wq, bq, wk, bk, h=H, mask=mask)
    jax.block_until_ready(attn_m)
    ref_m = _reference(query, key_t, wq, bq, wk, bk, H, mask=mask)
    assert jnp.allclose(attn_m, ref_m, **TOL), float(
        jnp.max(jnp.abs(attn_m - ref_m)))

    print("KERNEL_OK")
</pallas_src>

<mosaic_0001>
module attributes {stable_mosaic.version = 11 : i64} {
  func.func @_mha_kernel(%arg0: i32, %arg1: i32, %arg2: memref<1x8x32xbf16, #tpu.memory_space<vmem>>, %arg3: memref<1x8x32xbf16, #tpu.memory_space<vmem>>, %arg4: memref<32x128xbf16, #tpu.memory_space<vmem>>, %arg5: memref<1x128xf32, #tpu.memory_space<vmem>>, %arg6: memref<32x128xbf16, #tpu.memory_space<vmem>>, %arg7: memref<1x128xf32, #tpu.memory_space<vmem>>, %arg8: memref<1x1x8x8xf32, #tpu.memory_space<vmem>>) attributes {dimension_semantics = [#tpu.dimension_semantics<parallel>, #tpu.dimension_semantics<arbitrary>], iteration_bounds = array<i64: 2, 4>, scalar_prefetch = 0 : i64, scratch_operands = 0 : i64, tpu.core_type = #tpu.core_type<tc>, window_params = [{transform_indices = @transform_0, window_bounds = array<i64: 1, 8, 32>}, {transform_indices = @transform_1, window_bounds = array<i64: 1, 8, 32>}, {transform_indices = @transform_2, window_bounds = array<i64: 32, 128>}, {transform_indices = @transform_3, window_bounds = array<i64: 1, 128>}, {transform_indices = @transform_4, window_bounds = array<i64: 32, 128>}, {transform_indices = @transform_5, window_bounds = array<i64: 1, 128>}, {transform_indices = @transform_6, window_bounds = array<i64: 1, 1, 8, 8>}]} {
    %c0 = arith.constant 0 : index
    %c0_0 = arith.constant 0 : index
    %c0_1 = arith.constant 0 : index
    %0 = vector.load %arg2[%c0, %c0_0, %c0_1] : memref<1x8x32xbf16, #tpu.memory_space<vmem>>, vector<1x8x32xbf16>
    %1 = vector.shape_cast %0 : vector<1x8x32xbf16> to vector<8x32xbf16>
    %c0_2 = arith.constant 0 : index
    %c0_3 = arith.constant 0 : index
    %2 = vector.load %arg4[%c0_2, %c0_3] : memref<32x128xbf16, #tpu.memory_space<vmem>>, vector<32x128xbf16>
    %cst = arith.constant dense<0.000000e+00> : vector<8x128xf32>
    %3 = tpu.matmul %1, %2, %cst {dimension_numbers = #tpu.dot_dimension_numbers<[1], [0], [0], [1], [0, 0, 1, 1], [], []>} : vector<8x32xbf16>, vector<32x128xbf16>, vector<8x128xf32> -> vector<8x128xf32>
    %c0_4 = arith.constant 0 : index
    %c0_5 = arith.constant 0 : index
    %4 = vector.load %arg5[%c0_4, %c0_5] : memref<1x128xf32, #tpu.memory_space<vmem>>, vector<1x128xf32>
    %5 = vector.broadcast %4 : vector<1x128xf32> to vector<8x128xf32>
    %6 = arith.addf %3, %5 : vector<8x128xf32>
    %c0_6 = arith.constant 0 : index
    %c0_7 = arith.constant 0 : index
    %c0_8 = arith.constant 0 : index
    %7 = vector.load %arg3[%c0_6, %c0_7, %c0_8] : memref<1x8x32xbf16, #tpu.memory_space<vmem>>, vector<1x8x32xbf16>
    %8 = vector.shape_cast %7 : vector<1x8x32xbf16> to vector<8x32xbf16>
    %c0_9 = arith.constant 0 : index
    %c0_10 = arith.constant 0 : index
    %9 = vector.load %arg6[%c0_9, %c0_10] : memref<32x128xbf16, #tpu.memory_space<vmem>>, vector<32x128xbf16>
    %cst_11 = arith.constant dense<0.000000e+00> : vector<8x128xf32>
    %10 = tpu.matmul %8, %9, %cst_11 {dimension_numbers = #tpu.dot_dimension_numbers<[1], [0], [0], [1], [0, 0, 1, 1], [], []>} : vector<8x32xbf16>, vector<32x128xbf16>, vector<8x128xf32> -> vector<8x128xf32>
    %c0_12 = arith.constant 0 : index
    %c0_13 = arith.constant 0 : index
    %11 = vector.load %arg7[%c0_12, %c0_13] : memref<1x128xf32, #tpu.memory_space<vmem>>, vector<1x128xf32>
    %12 = vector.broadcast %11 : vector<1x128xf32> to vector<8x128xf32>
    %13 = arith.addf %10, %12 : vector<8x128xf32>
    %cst_14 = arith.constant 0.353553385 : f32
    %14 = vector.broadcast %cst_14 : f32 to vector<8x128xf32>
    %15 = arith.mulf %6, %14 : vector<8x128xf32>
    %16 = arith.truncf %15 : vector<8x128xf32> to vector<8x128xbf16>
    %17 = arith.truncf %13 : vector<8x128xf32> to vector<8x128xbf16>
    %cst_15 = arith.constant dense<0.000000e+00> : vector<8x8xf32>
    %18 = tpu.matmul %16, %17, %cst_15 {dimension_numbers = #tpu.dot_dimension_numbers<[1], [1], [0], [0], [0, 0, 1, 0], [], []>} : vector<8x128xbf16>, vector<8x128xbf16>, vector<8x8xf32> -> vector<8x8xf32>
    %cst_16 = arith.constant dense<0xFF800000> : vector<8xf32>
    %19 = vector.multi_reduction <maximumf>, %18, %cst_16 [1] : vector<8x8xf32> to vector<8xf32>
    %20 = vector.shape_cast %19 : vector<8xf32> to vector<8x1xf32>
    %21 = vector.broadcast %20 : vector<8x1xf32> to vector<8x8xf32>
    %22 = arith.subf %18, %21 : vector<8x8xf32>
    %23 = math.exp %22 : vector<8x8xf32>
    %cst_17 = arith.constant dense<0.000000e+00> : vector<8xf32>
    %24 = vector.multi_reduction <add>, %23, %cst_17 [1] : vector<8x8xf32> to vector<8xf32>
    %25 = vector.shape_cast %24 : vector<8xf32> to vector<8x1xf32>
    %26 = tpu.reciprocal %25 {approx = true} : vector<8x1xf32> -> vector<8x1xf32>
    %27 = vector.broadcast %26 : vector<8x1xf32> to vector<8x8xf32>
    %28 = arith.mulf %23, %27 : vector<8x8xf32>
    %c0_18 = arith.constant 0 : index
    %c0_19 = arith.constant 0 : index
    %c0_20 = arith.constant 0 : index
    %c0_21 = arith.constant 0 : index
    %29 = vector.load %arg8[%c0_18, %c0_19, %c0_20, %c0_21] : memref<1x1x8x8xf32, #tpu.memory_space<vmem>>, vector<1x1x8x8xf32>
    %30 = vector.shape_cast %29 : vector<1x1x8x8xf32> to vector<8x8xf32>
    %31 = vector.shape_cast %28 : vector<8x8xf32> to vector<1x1x8x8xf32>
    tpu.vector_store %arg8[%c0_18, %c0_19, %c0_20, %c0_21], %31 {strides = array<i32>} : memref<1x1x8x8xf32, #tpu.memory_space<vmem>>, vector<1x1x8x8xf32>,
    return
  }
  func.func @transform_0(%arg0: i32, %arg1: i32) -> (i32, i32, i32) {
    %c0_i32 = arith.constant 0 : i32
    %c0_i32_0 = arith.constant 0 : i32
    %c0_i32_1 = arith.constant 0 : i32
    return %arg0, %c0_i32, %c0_i32_0 : i32, i32, i32
  }
  func.func @transform_1(%arg0: i32, %arg1: i32) -> (i32, i32, i32) {
    %c0_i32 = arith.constant 0 : i32
    %c0_i32_0 = arith.constant 0 : i32
    %c0_i32_1 = arith.constant 0 : i32
    return %arg0, %c0_i32, %c0_i32_0 : i32, i32, i32
  }
  func.func @transform_2(%arg0: i32, %arg1: i32) -> (i32, i32) {
    %c0_i32 = arith.constant 0 : i32
    %c0_i32_0 = arith.constant 0 : i32
    return %c0_i32, %arg1 : i32, i32
  }
  func.func @transform_3(%arg0: i32, %arg1: i32) -> (i32, i32) {
    %c0_i32 = arith.constant 0 : i32
    %c0_i32_0 = arith.constant 0 : i32
    return %c0_i32, %arg1 : i32, i32
  }
  func.func @transform_4(%arg0: i32, %arg1: i32) -> (i32, i32) {
    %c0_i32 = arith.constant 0 : i32
    %c0_i32_0 = arith.constant 0 : i32
    return %c0_i32, %arg1 : i32, i32
  }
  func.func @transform_5(%arg0: i32, %arg1: i32) -> (i32, i32) {
    %c0_i32 = arith.constant 0 : i32
    %c0_i32_0 = arith.constant 0 : i32
    return %c0_i32, %arg1 : i32, i32
  }
  func.func @transform_6(%arg0: i32, %arg1: i32) -> (i32, i32, i32, i32) {
    %c0_i32 = arith.constant 0 : i32
    %c0_i32_0 = arith.constant 0 : i32
    %c0_i32_1 = arith.constant 0 : i32
    return %arg0, %arg1, %c0_i32, %c0_i32_0 : i32, i32, i32, i32
  }
}

</mosaic_0001>

<bundles_post_ra>
// kernel: tpu_custom_call.1
= control target key start
LH: loop header
LB: loop body
LE: loop exit
PB: predicated region body
PF: predicated region fallthrough
CT: control target
= control target key end

     0   :  { %s1662_s0 = inlined_call_operand.hbm [shape: bf16[2,8,32], index: 0, kind: input, shape index: {}]   ;;  %s1663_s1 = inlined_call_operand.hbm [shape: bf16[2,8,32], index: 1, kind: input, shape index: {}]   ;;  %s1664_s2 = inlined_call_operand.hbm [shape: bf16[32,512], index: 2, kind: input, shape index: {}]   ;;  %s1665_s3 = inlined_call_operand.vmem [shape: f32[1,512], index: 3, kind: input, shape index: {}]   ;;  %s1666_s4 = inlined_call_operand.hbm [shape: bf16[32,512], index: 4, kind: input, shape index: {}]   ;;  %s1667_s5 = inlined_call_operand.vmem [shape: f32[1,512], index: 5, kind: input, shape index: {}]   ;;  %s1668_s6 = inlined_call_operand.hbm [shape: f32[2,4,8,8], index: 6, kind: output, shape index: {}]  }
   0x1   :  { %1683 = sst [smem:[#allocation30_spill]] %s1662_s0 }
   0x2   :  { %1684 = sst [smem:[#allocation31_spill]] %s1663_s1 }
   0x3   :  { %1685 = sst [smem:[#allocation32_spill]] %s1664_s2 }
   0x4   :  { %1686 = sst [smem:[#allocation33_spill]] %s1667_s5 }
   0x5   :  { %1687 = sst [smem:[#allocation34_spill]] %s1668_s6 }
   0x6   :  { %11 = vsyncpa [#allocation3], 0 }
   0x7   :  { %13 = vsyncpa [#allocation3 + $0x1], 0 }
   0x8   :  { %14 = vsyncpa [#allocation6], 0 }
   0x9   :  { %16 = vsyncpa [#allocation6 + $0x1], 0 }
   0xa   :  { %17 = vsyncpa [#allocation9], 0 }
   0xb   :  { %19 = vsyncpa [#allocation9 + $0x1], 0 }
   0xc   :  { %20 = vsyncpa [#allocation4], 0 }
   0xd   :  { %22 = vsyncpa [#allocation4 + $0x1], 0  ;;  %s1326_s21 = smov 0   ;;  %s1328_s22 = smov 0  }
   0xe   :  { %s1330_s23 = smov 0   ;;  %s1332_s24 = smov 0  }
   0xf   :  { %s1334_s25 = smov 0   ;;  %s1336_s26 = smov 0  }
  0x10   :  { %s1338_s27 = smov 0   ;;  %s1340_s28 = smov 0  }
  0x11   :  { %s1342_s29 = smov 0   ;;  %s1344_s30 = smov 0  }
  0x12   :  { %s1346_s7 = smov 0   ;;  %s1348_s8 = smov 0  }
  0x13   :  { %s1350_s9 = smov 0   ;;  %s1352_s10 = smov 0  }
  0x14 LB: > { %1688 = sst [smem:[#allocation16_spill]] %s1227_s21  ;;  %s1395_s11 = sadd.s32 4294967295, %s1279_s10   ;;  %s1279_s10 = sphi %s1352_s10, %s28_s10   ;;  %s1275_s9 = sphi %s1350_s9, %s1735_s9   ;;  %s1271_s8 = sphi %s1348_s8, %s1742_s8   ;;  %s1267_s7 = sphi %s1346_s7, %s1733_s7   ;;  %s1263_s30 = sphi %s1344_s30, %s1732_s30   ;;  %s1259_s29 = sphi %s1342_s29, %s1741_s29   ;;  %s1255_s28 = sphi %s1340_s28, %s1740_s28   ;;  %s1251_s27 = sphi %s1338_s27, %s1739_s27   ;;  %s1247_s26 = sphi %s1336_s26, %s1738_s26   ;;  %s1243_s25 = sphi %s1334_s25, %s1737_s25   ;;  %s1239_s24 = sphi %s1332_s24, %s1736_s24   ;;  %s1235_s23 = sphi %s1330_s23, %s1729_s23   ;;  %s1231_s22 = sphi %s1328_s22, %s1728_s22   ;;  %s1227_s21 = sphi %s1326_s21, %s1727_s21  }
  0x15   : > { %1689 = sst [smem:[#allocation17_spill]] %s1231_s22  ;;  %s37_s13 = sadd.s32 1, %s1271_s8 }
  0x16   : > { %1690 = sst [smem:[#allocation18_spill]] %s1235_s23  ;;  %s40_s14 = sadd.s32 1, %s1275_s9 }
  0x17   : > { %1691 = sst [smem:[#allocation19_spill]] %s1267_s7  ;;  %p38_p0 = scmp.ge.s32.totalorder %s37_s13, 4 }
  0x18   : > { %1692 = sst [smem:[#allocation20_spill]] %s1271_s8  ;;  %s47_s15 = sadd.s32 1, %s1259_s29 }
  0x19   : > { %1693 = sst [smem:[#allocation21_spill]] %s1275_s9  ;;  %p54_p1 = scmp.ne.s32.totalorder %s1259_s29, %s1255_s28 }
  0x1a   : > { %1694 = sst [smem:[#allocation22_spill]] %s1279_s10  ;;  %p55_p2 = scmp.eq.s32.totalorder %s1279_s10, 0 }
  0x1b   : > { %s1744_s13 = smov (%p38_p0, %s37_s13), 0  ;;  %s1746_s14 = smov (!%p38_p0, %s40_s14), %s1275_s9 }
  0x1c   : > { %1695 = sst [smem:[#allocation23_spill]] %s1744_s13  ;;  %p1409_p3 = por %p55_p2, %p54_p1 }
  0x1d   : > { %p60_p4 = scmp.ne.s32.totalorder %s1255_s28, %s1251_s27  ;;  %p42_p5 = scmp.ge.s32.totalorder %s1746_s14, 2 }
  0x1e   : > { %p61_p6 = scmp.eq.s32.totalorder %s1395_s11, 0  ;;  %s96_s17 = ssub.s32 %s1271_s8, %s1744_s13 }
  0x1f   : > { %s99_s18 = sadd.s32 1, %s1247_s26  ;;  %s1748_s14 = smov (%p42_p5, %s1746_s14), 0 }
  0x20   : > { %1697 = sst [smem:[#allocation24_spill]] %s1748_s14  ;;  %p1422_p7 = por %p61_p6, %p60_p4 }
  0x21   : > { %p97_p8 = scmp.eq.s32.totalorder %s96_s17, 0  ;;  %s44_s20 = ssub.s32 %s1275_s9, %s1748_s14 }
  0x22   : > { %p106_p9 = scmp.ne.s32.totalorder %s1247_s26, %s1243_s25  ;;  %p45_p10 = scmp.eq.s32.totalorder %s44_s20, 0 }
  0x23   : > { %p112_p11 = scmp.ne.s32.totalorder %s1243_s25, %s1239_s24  ;;  %s202_s24 = sor.u32 %s96_s17, %s44_s20 }
  0x24   : > { %s1433_s27 = scalar_select %p97_p8, %s1247_s26, %s99_s18  }
  0x25   : > { %s1436_s12 = scalar_select %p45_p10, %s1259_s29, %s47_s15  }
  0x26   : > { %1699 = sst [smem:[#allocation25_spill]] %s1433_s27  ;;  %p1440_p12 = por %p106_p9, %p55_p2 }
  0x27   : > { %1700 = sst [smem:[#allocation26_spill]] %s1436_s12  ;;  %p1446_p13 = por %p112_p11, %p61_p6 }
  0x28   : > { %s205_s6 = sadd.s32 1, %s1235_s23  ;;  %p203_p0 = scmp.eq.s32.totalorder %s202_s24, 0 }
  0x29   : > { %p215_p1 = scmp.ne.s32.totalorder %s1235_s23, %s1231_s22  ;;  %p216_p4 = scmp.eq.s32.totalorder %s1395_s11, 7 }
  0x2a   : > { %p221_p5 = scmp.ne.s32.totalorder %s1231_s22, %s1227_s21  ;;  %s1706_s12 = sadd.s32 4294967294, %s1279_s10  }
  0x2b   : > { %s1457_s15 = scalar_select %p203_p0, %s1235_s23, %s205_s6  }
  0x2c   : > { %p1459_p2 = por %p216_p4, %p215_p1  ;;  %p222_p6 = scmp.eq.s32.totalorder %s1706_s12, 7 }
  0x2d   : > { %1703 = sst [smem:[#allocation27_spill]] %s1457_s15  ;;  %p884_p8 = scmp.lt.s32.totalorder %s1279_s10, 8 }
  0x2e   : > { %s1704_s18 = scalar_select %p1459_p2, 1, 0 }
  0x2f   : > { %p1466_p9 = por %p222_p6, %p221_p5  ;;  %s1677_s17 = sand.u32 1, %s1259_s29  }
  0x30   : > { %1705 = sst [smem:[#allocation28_spill]] %s1704_s18  ;;  %s1473_s20 = sshll.u32 %s1677_s17, 2 }
  0x31   : > { %s1707_s27 = scalar_select %p1466_p9, 1, 0 }
  0x32   : > { %s801_s24 = sshll.u32 %s1275_s9, 6  ;;  %p1478_p10 = pnand %p884_p8, %p1409_p3 }
  0x33   : > { %1708 = sst [smem:[#allocation29_spill]] %s1707_s27  ;;  %s260_s15 = sand.u32 1, %s1279_s10  }
  0x34   : > { %s1710_s1 = sld [smem:[#allocation31_spill]]  ;;  %s264_s18 = scalar_lea.vmem [#allocation5], %s1473_s20 }
  0x35   : > { %s271_s27 = sshll.u32 %s264_s18, 4  ;;  %p1489_p11 = pnand %p884_p8, %p1440_p12  ;;  %s272_s27 = int_to_ptr.vmem [resolvable:$true] %s271_s27 }
  0x36   : > { %p808_p0 = scmp.ge.s32.totalorder %s1279_s10, 1  ;;  %s1494_s16 = scalar_lea.sflag [#allocation6], %s260_s15 }
  0x37   : > { %p1013_p3 = pneg %p1478_p10  ;;  %s1024_s9 = scalar_lea.vmem %s272_s27, 64 }
  0x38   : > { %p1025_p1 = scmp.ne.s32.totalorder %s272_s27, %s1024_s9  ;;  %s1281_s23 = smov [#allocation5]  }
  0x39   : > { %s1029_s12 = sshll.u32 %s1281_s23, 4  ;;  %s1030_s12 = int_to_ptr.vmem [resolvable:$false] %s1029_s12 }
  0x3a   : > { %s269_s21 = scalar_lea.hbm %s1710_s1, %s801_s24  ;;  %p1027_p4 = pnand %p1025_p1, %p1013_p3 }
  0x3b   : > { %s1031_s13 = scalar_lea.vmem %s1030_s12, 128  ;;  %p1032_p12 = scmp.lt.s32.totalorder %s272_s27, %s1030_s12 }
  0x3c   : > { %p1028_p5 = pneg %p1027_p4  ;;  %p1033_p6 = scmp.lt.s32.totalorder %s1031_s13, %s1024_s9 }
  0x3e   : > { %p1034_p8 = por %p1033_p6, %p1032_p12 }
  0x40   : > { %p1035_p9 = pnand %p1034_p8, %p1028_p5 }
  0x42   : > { %1038 = shalt.err (!%p1035_p9)
}
  0x43   : > { %873 = dma.hbm_to_vmem [thread:$0]  (!%p1478_p10), %s269_s21, 64, %s272_s27, %s1494_s16  }
  0x44   : > { %p328_p1 = scmp.lt.s32.totalorder %s1279_s10, 9  ;;  %s1713_s0 = sld [smem:[#allocation30_spill]] }
  0x45   : > { %s246_s12 = scalar_lea.vmem [#allocation2], %s1473_s20  ;;  %s280_s1 = sand.u32 1, %s1247_s26  }
  0x46   : > { %p1507_p4 = pnand %p808_p0, %p328_p1  ;;  %s253_s13 = sshll.u32 %s246_s12, 4  ;;  %s254_s13 = int_to_ptr.vmem [resolvable:$true] %s253_s13 }
  0x47   : > { %s1518_s7 = sshll.u32 %s280_s1, 4  ;;  %s1714_s22 = sand.u32 1, %s1259_s29  }
  0x48   : > { %s243_s5 = scalar_lea.sflag [#allocation3], %s1714_s22  ;;  %s1052_s21 = scalar_lea.vmem %s254_s13, 64 }
  0x49   : > { %p1053_p9 = scmp.ne.s32.totalorder %s254_s13, %s1052_s21  ;;  %s1282_s27 = smov [#allocation2]  }
  0x4a   : > { %s251_s23 = scalar_lea.hbm %s1713_s0, %s801_s24  ;;  %s1057_s10 = sshll.u32 %s1282_s27, 4  ;;  %s1058_s10 = int_to_ptr.vmem [resolvable:$false] %s1057_s10 }
  0x4b   : > { %p1055_p0 = pnand %p1053_p9, %p1013_p3  ;;  %s1059_s9 = scalar_lea.vmem %s1058_s10, 128 }
  0x4c   : > { %p1060_p12 = scmp.lt.s32.totalorder %s254_s13, %s1058_s10  ;;  %p1061_p6 = scmp.lt.s32.totalorder %s1059_s9, %s1052_s21 }
  0x4d   : > { %p1056_p5 = pneg %p1055_p0 }
  0x4e   : > { %p1062_p8 = por %p1061_p6, %p1060_p12 }
  0x50   : > { %p1063_p1 = pnand %p1062_p8, %p1056_p5 }
  0x52   : > { %1066 = shalt.err (!%p1063_p1)
}
  0x53   : > { %870 = dma.hbm_to_vmem [thread:$0]  (!%p1478_p10), %s251_s23, 64, %s254_s13, %s243_s5  }
  0x54   : > { %s805_s22 = sshll.u32 %s1271_s8, 6  ;;  %s1715_s2 = sld [smem:[#allocation32_spill]] }
  0x55   : > { %s282_s12 = scalar_lea.vmem [#allocation7], %s1518_s7  ;;  %p1069_p3 = pneg %p1489_p11 }
  0x56   : > { %s288_s27 = sshll.u32 %s282_s12, 4  ;;  %s1283_s6 = smov [#allocation7]   ;;  %s289_s27 = int_to_ptr.vmem [resolvable:$true] %s288_s27 }
  0x57   : > { %s1080_s10 = scalar_lea.vmem %s289_s27, 256  ;;  %s1085_s21 = sshll.u32 %s1283_s6, 4  ;;  %s1086_s21 = int_to_ptr.vmem [resolvable:$false] %s1085_s21 }
  0x58   : > { %p1081_p9 = scmp.ne.s32.totalorder %s289_s27, %s1080_s10  ;;  %s1087_s5 = scalar_lea.vmem %s1086_s21, 512 }
  0x59   : > { %p1088_p10 = scmp.lt.s32.totalorder %s289_s27, %s1086_s21  ;;  %p1089_p12 = scmp.lt.s32.totalorder %s1087_s5, %s1080_s10 }
  0x5a   : > { %s287_s18 = scalar_lea.hbm %s1715_s2, %s805_s22  ;;  %p1083_p0 = pnand %p1081_p9, %p1069_p3 }
  0x5b   : > { %p1090_p6 = por %p1089_p12, %p1088_p10 }
  0x5c   : > { %p1084_p5 = pneg %p1083_p0 }
  0x5e   : > { %p1091_p8 = pnand %p1090_p6, %p1084_p5 }
  0x60   : > { %1094 = shalt.err (!%p1091_p8)
}
  0x61   : > { %s1284_s23 = smov 256   ;;  %s1285_s13 = smov 64  }
  0x62   : > { %s1286_s9 = smov 4   ;;  %s313_s12 = scalar_lea.hbm %s1666_s4, %s805_s22 }
  0x63   : > { %876 = dma.hbm_to_vmem [thread:$0]  (!%p1489_p11), %s287_s18, 256, %s289_s27, %s1494_s16, %s1284_s23, %s1285_s13, %s1286_s9  }
  0x64   : > { %s308_s6 = scalar_lea.vmem [#allocation8], %s1518_s7  ;;  %s305_s10 = scalar_lea.sflag [#allocation9], %s280_s1 }
  0x65   : > { %s314_s21 = sshll.u32 %s308_s6, 4  ;;  %s1287_s0 = smov [#allocation8]   ;;  %s315_s21 = int_to_ptr.vmem [resolvable:$true] %s314_s21 }
  0x66   : > { %s1108_s5 = scalar_lea.vmem %s315_s21, 256  ;;  %s1113_s2 = sshll.u32 %s1287_s0, 4  ;;  %s1114_s2 = int_to_ptr.vmem [resolvable:$false] %s1113_s2 }
  0x67   : > { %p1109_p1 = scmp.ne.s32.totalorder %s315_s21, %s1108_s5  ;;  %s1115_s8 = scalar_lea.vmem %s1114_s2, 512 }
  0x68   : > { %p1116_p5 = scmp.lt.s32.totalorder %s315_s21, %s1114_s2  ;;  %p1117_p10 = scmp.lt.s32.totalorder %s1115_s8, %s1108_s5 }
  0x69   : > { %p1111_p9 = pnand %p1109_p1, %p1069_p3 }
  0x6a   : > { %p1118_p12 = por %p1117_p10, %p1116_p5 }
  0x6b   : > { %p1112_p0 = pneg %p1111_p9 }
  0x6d   : > { %p1119_p6 = pnand %p1118_p12, %p1112_p0 }
  0x6f   : > { %1122 = shalt.err (!%p1119_p6)
}
  0x70   : > { %879 = dma.hbm_to_vmem [thread:$0]  (!%p1489_p11), %s313_s12, 256, %s315_s21, %s305_s10, %s1284_s23, %s1285_s13, %s1286_s9  }
  0x71   : > { %332 = sbr.rel (%p1507_p4) target bundleno = 860 (0x35c), region = 44  ;;  %s334_s1 = sand.u32 (!%p1507_p4), 1, %s1255_s28  }
  0x72   : > { %s1554_s7 = sshll.u32 (!%p1507_p4), %s334_s1, 2  ;;  %s335_s0 = scalar_lea.sflag (!%p1507_p4), [#allocation3], %s334_s1 }
  0x73   : > { %s338_s16 = scalar_lea.vmem (!%p1507_p4), [#allocation2], %s1554_s7 }
  0x76   : > { %1206 = dma.done.wait (%p1422_p7), %s335_s0, 64  }
  0x77   : > { %1208 = vsyncadd (%p1422_p7), %s335_s0, 4294967232  ;;  %s343_s2 = sand.u32 1, %s1395_s11   ;;  %s347_s17 = scalar_lea.vmem [#allocation5], %s1554_s7 }
  0x78   : > { %s344_s8 = scalar_lea.sflag [#allocation6], %s343_s2 }
  0x79   : > { %1210 = dma.done.wait (%p1422_p7), %s344_s8, 64  }
  0x7a   : > { %1212 = vsyncadd (%p1422_p7), %s344_s8, 4294967232  ;;  %s354_s15 = sand.u32 1, %s1243_s25  }
  0x7b   : > { %s811_s22 = sshll.u32 %s354_s15, 4 }
  0x7c   : > { %s356_s18 = scalar_lea.vmem [#allocation7], %s811_s22 }
  0x7d   : > { %1214 = dma.done.wait (%p1446_p13), %s344_s8, 256  }
  0x7e   : > { %1216 = vsyncadd (%p1446_p13), %s344_s8, 4294967040  ;;  %s362_s27 = scalar_lea.sflag [#allocation9], %s354_s15  ;;  %s365_s11 = scalar_lea.vmem [#allocation8], %s811_s22 }
  0x7f   : > { %1218 = dma.done.wait (%p1446_p13), %s362_s27, 256  }
  0x80   : > { %1220 = vsyncadd (%p1446_p13), %s362_s27, 4294967040  ;;  %v1288_v0 = vmov 0.0   ;;  %vm1289_vm0 = vmmov 0   ;;  %v1003_v1 = vld [vmem:[%s356_s18 + $0x8] sm:$0xff]   ;;  %v1005_v3 = vld [vmem:[%s356_s18] sm:$0xff]   ;;  %vm446_vm1 = vcmask 261120  }
  0x81   : > { %835 = vmatprep.subr.bf16.mxu0 %v1288_v0  ;;  %843 = vmatprep.subr.bf16.mxu1 %v1288_v0  ;;  %v1004_v2 = vld [vmem:[%s365_s11 + $0x8] sm:$0xff]   ;;  %v1006_v4 = vld [vmem:[%s365_s11] sm:$0xff]   ;;  %p415_p7 = scmp.lt.s32.totalorder %s1263_s30, 3  ;;  %s1716_s24 = sld [smem:[#allocation33_spill]]  ;;  %vm600_vm2 = vcmask 64512  }
  0x82   : > { %839 = vmatprep.mubr.msk.bf16.mxu0 %vm1289_vm0, %v1288_v0  ;;  %847 = vmatprep.mubr.msk.bf16.mxu1 %vm1289_vm0, %v1288_v0  ;;  %v422_v5 = vld [vmem:[%s338_s16] sm:$0xf]  ;;  %v490_v6 = vld [vmem:[%s347_s17] sm:$0xf]  ;;  %s1717_s6 = sld [smem:[#allocation17_spill]]  ;;  %s1290_s19 = smov [#allocation10]  }
  0x83   : > { %836 = vmatpush3.bf16.msra.mxu0 %v1003_v1  ;;  %844 = vmatpush3.bf16.msra.mxu1 %v1004_v2  ;;  %s416_s14 = scalar_select %p415_p7, %s1263_s30, 3 }
  0x84   : > { %837 = vmatprep.subr.bf16.mxu0 %v1288_v0  ;;  %845 = vmatprep.subr.bf16.mxu1 %v1288_v0  ;;  %s1718_s21 = sld [smem:[#allocation19_spill]] }
  0x85   : > { %s417_s13 = scalar_lea.vmem %s1665_s3, %s416_s14  ;;  %s1720_s22 = sld [smem:[#allocation34_spill]] }
  0x86   : > { %v814_v7 = vld [vmem:[%s417_s13] ss:$0 sm:$0xff] }
  0x87   : > { %838 = vmatpush3.bf16.msra.mxu0 %v1005_v3  ;;  %846 = vmatpush3.bf16.msra.mxu1 %v1006_v4  ;;  %s420_s12 = scalar_lea.vmem %s1716_s24, %s416_s14 }
  0x88   : > { %851 = vmatprep.subr.bf16.mxu0 %v1288_v0  ;;  %v818_v8 = vld [vmem:[%s420_s12] ss:$0 sm:$0xff]  ;;  %s412_s5 = sand.u32 1, %s1717_s6  }
  0x89   : > { %s813_s1 = sshll.u32 %s412_s5, 3  ;;  %s614_s11 = scalar_lea.sflag [#allocation4], %s412_s5 }
  0x8a   : > { %840 = vmatmul.mubr.msk.bf16.vlgmr.msra.gmra.mxu0 %vm446_vm1, %v422_v5  ;;  %848 = vmatmul.mubr.msk.bf16.vlgmr.msra.gmra.mxu1 %vm446_vm1, %v490_v6  ;;  %s823_s7 = sshll.u32 %s1718_s21, 2  ;;  %s414_s2 = scalar_lea.vmem [#allocation10], %s813_s1 }
  0x8b   : > { %853 = vmatprep.mubr.msk.bf16.mxu0 %vm1289_vm0, %v1288_v0  ;;  %s625_s0 = sadd.s32 %s1263_s30, %s823_s7  ;;  %s629_s8 = sshll.u32 %s414_s2, 4  ;;  %s630_s8 = int_to_ptr.vmem [resolvable:$true] %s629_s8 }
  0x8c   : > { %s824_s16 = sshll.u32 %s625_s0, 7  ;;  %s1721_s18 = smov %s1720_s22 }
  0x8d   : > { %s627_s27 = scalar_lea.hbm %s1720_s22, %s824_s16  ;;  %s1123_s14 = scalar_lea.vmem %s630_s8, 128 }
  0x8e   : > { %p1124_p13 = scmp.ne.s32.totalorder %s630_s8, %s1123_s14  ;;  %s1127_s30 = sshll.u32 %s1290_s19, 4  ;;  %s1128_s30 = int_to_ptr.vmem [resolvable:$false] %s1127_s30 }
  0x8f   : > { %s1129_s23 = scalar_lea.vmem %s1128_s30, 256  ;;  %p1130_p3 = scmp.lt.s32.totalorder %s630_s8, %s1128_s30 }
  0x90   : > { %p1125_p11 = pnand %p1124_p13, %p1459_p2  ;;  %p1131_p8 = scmp.lt.s32.totalorder %s1129_s23, %s1123_s14 }
  0x92   : > { %p1126_p4 = pneg %p1125_p11  ;;  %p1132_p1 = por %p1131_p8, %p1130_p3 }
  0x94   : > { %p1133_p9 = pnand %p1132_p1, %p1126_p4 }
 0x14a   : > { %v484_v9 = vpop.f32.mrf.mxu0  ;;  %v551_v11 = vpop.f32.mrf.mxu1 }
 0x14b   : > { %v485_v10 = vadd.f32 %v814_v7, %v484_v9  ;;  %v552_v12 = vadd.f32 %v818_v8, %v551_v11 }
 0x14c   : > { %v841_v13 = vpop.f32.mrf.mxu0  ;;  %v849_v14 = vpop.f32.mrf.mxu1 }
 0x14d   : > { %v559_v15 = vpack.c.bf16 %v552_v12, %v552_v12  ;;  %v557_v17 = vmul.f32 0.35355338, %v485_v10 }
 0x14e   : > { %v487_v16 = vpop.f32.mrf.mxu0  ;;  %v554_v18 = vpop.f32.mrf.mxu1 }
 0x14f   : > { %852 = vmatpush3.bf16.xpose.msra.mxu0 %v559_v15  ;;  %v558_v21 = vpack.c.bf16 %v557_v17, %v557_v17 }
 0x150   : > { %v842_v19 = vpop.f32.mrf.mxu0  ;;  %v850_v20 = vpop.f32.mrf.mxu1 }
 0x156   : > { %854 = vmatmul.mubr.bf16.vlgmr.msra.gmra.mxu0 %v558_v21 }
 0x216   : > { %v594_v22 = vpop.f32.mrf.mxu0 }
 0x217   : > { %v601_v23 = vsel %vm600_vm2, %v594_v22, -inf }
 0x218   : > { %602 = vmax.xlane.f32.xlu0 %v601_v23  ;;  %v855_v24 = vpop.f32.mrf.mxu0 }
 0x21a   : > { %v597_v25 = vpop.f32.mrf.mxu0 }
 0x21c   : > { %v856_v26 = vpop.f32.mrf.mxu0 }
 0x2a1   : > { %v603_v27 = vpop.xlane.xlu0 %602 }
 0x2a2   : > { %v604_v28 = vsub.f32 %v594_v22, %v603_v27 }
 0x2a4   : > { %v605_v29 = vmul.f32 1.442695, %v604_v28 }
 0x2a6   : > { %1007 = vpow2.f32 %v605_v29 }
 0x2b3   : > { %v1008_v30 = vpop.eup %1007 }
 0x2b4   : > { %v607_v31 = vsel %vm600_vm2, %v1008_v30, 0.0 }
 0x2b5   : > { %608 = vadd.xlane.f32.xlu0 %v607_v31 }
 0x33e   : > { %v609_v32 = vpop.xlane.xlu0 %608 }
 0x33f   : > { %1009 = vrcp.f32 %v609_v32 }
 0x34c   : > { %v1010_v33 = vpop.eup %1009 }
 0x34d   : > { %v611_v34 = vmul.f32 %v1010_v33, %v1008_v30 }
 0x34f   : > { %612 = vst.msk [vmem:[%s414_s2] sm:$0xff] %vm600_vm2, %v611_v34 }
 0x350   : > { %1136 = shalt.err (!%p1133_p9)
}
 0x351   : > { %s1137_s13 = scalar_lea.hbm %s627_s27, 128  ;;  %s1141_s24 = scalar_lea.hbm %s1721_s18, 1024 }
 0x352   : > { %p1138_p0 = scmp.ne.s32.totalorder %s627_s27, %s1137_s13  ;;  %p1142_p12 = scmp.lt.s32.totalorder %s627_s27, %s1721_s18 }
 0x353   : > { %p1143_p6 = scmp.lt.s32.totalorder %s1141_s24, %s1137_s13 }
 0x354   : > { %p1139_p5 = pnand %p1138_p0, %p1459_p2 }
 0x355   : > { %p1144_p7 = por %p1143_p6, %p1142_p12 }
 0x356   : > { %p1140_p10 = pneg %p1139_p5 }
 0x358   : > { %p1145_p13 = pnand %p1144_p7, %p1140_p10 }
 0x35a   : > { %1148 = shalt.err (!%p1145_p13)
}
 0x35b   : > { %865 = dma.vmem_to_hbm [thread:$0]  (%p1459_p2), %s630_s8, 128, %s627_s27, %s614_s11  }
 0x35c PF: > { %s1722_s21 = sld [smem:[#allocation22_spill]] }
 0x35d   : > { %s1723_s5 = sld [smem:[#allocation16_spill]] }
 0x35e   : > { %s1724_s1 = sld [smem:[#allocation29_spill]] }
 0x362   : > { %p885_p11 = scmp.ge.s32.totalorder %s1722_s21, 2 }
 0x363   : > { %s641_s7 = sand.u32 1, %s1723_s5  }
 0x364   : > { %p1725_p4 = scmp.ne.s32.totalorder %s1724_s1, 0  ;;  %s642_s0 = scalar_lea.sflag [#allocation4], %s641_s7 }
 0x366   : > { %p881_p3 = pnand %p885_p11, %p1725_p4 }
 0x368   : > { %p882_p8 = pneg %p881_p3 }
 0x36a   : > { %1222 = dma.done.wait (%p882_p8), %s642_s0, 128  }
 0x36b   : > { %1224 = vsyncadd (%p882_p8), %s642_s0, 4294967168  ;;  %s28_s10 = sadd.s32 1, %s1722_s21   ;;  %s1727_s21 = sld [smem:[#allocation17_spill]] }
 0x36c   : > { %p1615_p1 = scmp.ge.s32.totalorder %s28_s10, 10   ;;  %s1728_s22 = sld [smem:[#allocation18_spill]] }
 0x36d   : > { %s1729_s23 = sld [smem:[#allocation27_spill]]  ;;  %s1736_s24 = smov %s1243_s25 }
 0x36e   : > { %s1730_s2 = sld [smem:[#allocation25_spill]]  ;;  %s1737_s25 = smov %s1247_s26 }
 0x36f   : > { %s1731_s8 = sld [smem:[#allocation26_spill]]  ;;  %s1739_s27 = smov %s1255_s28 }
 0x370   : > { %s1732_s30 = sld [smem:[#allocation20_spill]]  ;;  %s1740_s28 = smov %s1259_s29 }
 0x371   : > { %s1733_s7 = sld [smem:[#allocation21_spill]] }
 0x372   : > { %s1734_s17 = sld [smem:[#allocation23_spill]] }
 0x373   : > { %s1735_s9 = sld [smem:[#allocation24_spill]] }
 0x374   : > { %s1738_s26 = smov %s1730_s2  ;;  %27 = sbr.rel (!%p1615_p1) target bundleno = 20 (0x14), region = 132 }
 0x375   : > { %s1741_s29 = smov %s1731_s8 }
 0x378   : > { %s1742_s8 = smov %s1734_s17 }
 0x379   :  { %647 = vsyncpa [#allocation3], 1 }
 0x37a   :  { %649 = vsyncpa [#allocation3 + $0x1], 1 }
 0x37b   :  { %650 = vsyncpa [#allocation6], 1 }
 0x37c   :  { %652 = vsyncpa [#allocation6 + $0x1], 1 }
 0x37d   :  { %653 = vsyncpa [#allocation9], 1 }
 0x37e   :  { %655 = vsyncpa [#allocation9 + $0x1], 1 }
 0x37f   :  { %656 = vsyncpa [#allocation4], 1 }
 0x380   :  { %658 = vsyncpa [#allocation4 + $0x1], 1 }

</bundles_post_ra>
